<compile_context>
chip_gen: v5e
topology: v5e:2x2
jax: 0.10.0
libtpu: 0.0.40
codegen_flags: <defaults>
</compile_context>

<pallas_src>
import functools

import jax
import jax.numpy as jnp
from jax.experimental import pallas as pl
from jax.experimental.pallas import tpu as pltpu

_MIB = 1024 * 1024


def _largest_divisor(n, cap, multiple_of=1):
    """Largest divisor of n that is <= cap and a multiple of `multiple_of` (0 if none)."""
    best = 0
    d = 1
    while d * d <= n:
        if n % d == 0:
            for c in (d, n // d):
                if c <= cap and c % multiple_of == 0 and c > best:
                    best = c
        d += 1
    return best


def _tpu_vmem_capacity_bytes():
    """Physical VMEM per core; conservative (v7x = 64 MiB) if the query fails."""
    try:
        info = pltpu.get_tpu_info()
        cap = getattr(info, "vmem_capacity_bytes", None)
        if cap:
            return int(cap)
    except Exception:
        pass
    return 64 * _MIB


def _budgets(block_cap_bytes, vmem_limit_bytes):
    """Generation-aware per-block budget and explicit scoped-VMEM limit."""
    cap = _tpu_vmem_capacity_bytes()
    if cap <= 64 * _MIB:          # v7x (or unknown): 64 MiB physical VMEM / TC
        default_block_cap = 6 * _MIB
        default_vmem_limit = 48 * _MIB
    else:                         # v5e / v6e: 128 MiB physical VMEM
        default_block_cap = 12 * _MIB
        default_vmem_limit = 96 * _MIB
    if block_cap_bytes is None:
        block_cap_bytes = default_block_cap
    if vmem_limit_bytes is None:
        vmem_limit_bytes = default_vmem_limit
    return int(block_cap_bytes), int(vmem_limit_bytes)


# --------------------------------------------------------------------------
# Fused kernel: mean -> fc1 -> ReLU -> fc2 -> sigmoid -> broadcast-multiply,
# all on one resident (tb, C, L) slab.
# --------------------------------------------------------------------------
def _fused_kernel(x_ref, w1_ref, w2_ref, o_ref, *, inv_len):
    x = x_ref[...]                                                  # (tb, C, L)
    y = jnp.sum(x.astype(jnp.float32), axis=-1) * inv_len           # (tb, C) mean, f32
    h = jnp.maximum(
        jnp.dot(y, w1_ref[...], preferred_element_type=jnp.float32), 0.0)
    g = jax.nn.sigmoid(
        jnp.dot(h, w2_ref[...], preferred_element_type=jnp.float32))
    # Multiply in the input dtype (no f32 upcast of the big slab).
    o_ref[...] = x * g.astype(o_ref.dtype)[:, :, None]


# --------------------------------------------------------------------------
# Fallback pass 1: pooled mean over tiled L -> MLP -> sigmoid => gate (x.dtype)
# --------------------------------------------------------------------------
def _gate_kernel(x_ref, w1_ref, w2_ref, g_ref, acc_ref, *, inv_len):
    l = pl.program_id(1)

    @pl.when(l == 0)
    def _():
        acc_ref[...] = jnp.zeros_like(acc_ref)

    # Partial sum over this length tile; reduction math in f32.
    acc_ref[...] += jnp.sum(x_ref[...].astype(jnp.float32), axis=-1)

    @pl.when(l == pl.num_programs(1) - 1)
    def _():
        y = acc_ref[...] * inv_len                                  # (tb, C) mean
        h = jnp.maximum(
            jnp.dot(y, w1_ref[...], preferred_element_type=jnp.float32), 0.0)
        g = jax.nn.sigmoid(
            jnp.dot(h, w2_ref[...], preferred_element_type=jnp.float32))
        # Emit the gate already in x.dtype so pass 2 is a pure multiply.
        g_ref[...] = g[:, :, None].astype(g_ref.dtype)


# --------------------------------------------------------------------------
# Fallback pass 2: broadcast-multiply in the input dtype.
# --------------------------------------------------------------------------
def _apply_kernel(x_ref, g_ref, o_ref):
    o_ref[...] = x_ref[...] * g_ref[...]


def channel_gate(x, w1, w2, *, block_cap_bytes=None, vmem_limit_bytes=None,
                 donate_x=False):
    """x: (B, C, L); w1: PyTorch fc1 weight (Cr, C); w2: PyTorch fc2 weight (C, Cr).

    Implements the `reduction=True` branch of the module (two bias-free Linears).
    """
    # TODO(synk): the reduction=False branch (single Linear -> ReLU -> Sigmoid)
    # is not wired up here; only the two-Linear gate used by TSCTNet is implemented.
    B, C, L = x.shape
    Cr = w1.shape[0]
    itemsize = x.dtype.itemsize
    # Pre-transpose so the kernel does plain y @ W (PyTorch Linear is y @ W.T).
    w1_t = jnp.asarray(w1).T  # (C, Cr)
    w2_t = jnp.asarray(w2).T  # (Cr, C)

    block_cap_bytes, vmem_limit_bytes = _budgets(block_cap_bytes, vmem_limit_bytes)
    compiler_kwargs = dict(vmem_limit_bytes=vmem_limit_bytes)

    row_bytes = C * L * itemsize  # one batch row at full length

    # ---------------- fused single-pass path -------------------------------
    if row_bytes <= block_cap_bytes:
        tb_cap = max(1, block_cap_bytes // row_bytes)
        if B >= 2:
            # >= 2 grid steps on the parallel batch axis so both v7x TCs work.
            tb_cap = min(tb_cap, B // 2)
        tb = _largest_divisor(B, cap=tb_cap) or 1
        grid = (B // tb,)

        return pl.pallas_call(
            functools.partial(_fused_kernel, inv_len=1.0 / float(L)),
            out_shape=jax.ShapeDtypeStruct((B, C, L), x.dtype),
            grid_spec=pltpu.PrefetchScalarGridSpec(
                num_scalar_prefetch=0,
                grid=grid,
                in_specs=[
                    pl.BlockSpec((tb, C, L), lambda b: (b, 0, 0)),
                    pl.BlockSpec((C, Cr), lambda b: (0, 0)),
                    pl.BlockSpec((Cr, C), lambda b: (0, 0)),
                ],
                out_specs=pl.BlockSpec((tb, C, L), lambda b: (b, 0, 0)),
            ),
            compiler_params=pltpu.CompilerParams(
                dimension_semantics=("parallel",), **compiler_kwargs),
            input_output_aliases=({0: 0} if donate_x else {}),
        )(x, w1_t, w2_t)

    # ---------------- two-pass fallback (L too long for one block) ---------
    # TODO(synk): for bf16/int8 inputs with small C, a 2-D (B*C, L) sublane-dense
    # repack of this fallback would give contiguous DMA descriptors / full vreg
    # occupancy; minor for f32 so kept 3-D here.
    lane_cap = max(128, block_cap_bytes // max(1, C * itemsize))
    tl = _largest_divisor(L, cap=lane_cap, multiple_of=128) or L
    tb_cap = max(1, block_cap_bytes // max(1, C * tl * itemsize))
    if B >= 2:
        tb_cap = min(tb_cap, B // 2)
    tb = _largest_divisor(B, cap=tb_cap) or 1
    grid = (B // tb, L // tl)

    # Pass 1: gate (B, C, 1) in x.dtype (sigmoid in f32, cast at the store).
    gate = pl.pallas_call(
        functools.partial(_gate_kernel, inv_len=1.0 / float(L)),
        out_shape=jax.ShapeDtypeStruct((B, C, 1), x.dtype),
        grid_spec=pltpu.PrefetchScalarGridSpec(
            num_scalar_prefetch=0,
            grid=grid,
            in_specs=[
                pl.BlockSpec((tb, C, tl), lambda b, l: (b, 0, l)),
                pl.BlockSpec((C, Cr), lambda b, l: (0, 0)),
                pl.BlockSpec((Cr, C), lambda b, l: (0, 0)),
            ],
            out_specs=pl.BlockSpec((tb, C, 1), lambda b, l: (b, 0, 0)),
            scratch_shapes=[pltpu.VMEM((tb, C), jnp.float32)],
        ),
        compiler_params=pltpu.CompilerParams(
            dimension_semantics=("parallel", "arbitrary"), **compiler_kwargs),
    )(x, w1_t, w2_t)

    # Pass 2: gated broadcast-multiply, fully parallel over (B, L).
    out = pl.pallas_call(
        _apply_kernel,
        out_shape=jax.ShapeDtypeStruct((B, C, L), x.dtype),
        grid_spec=pltpu.PrefetchScalarGridSpec(
            num_scalar_prefetch=0,
            grid=grid,
            in_specs=[
                pl.BlockSpec((tb, C, tl), lambda b, l: (b, 0, l)),
                pl.BlockSpec((tb, C, 1), lambda b, l: (b, 0, 0)),
            ],
            out_specs=pl.BlockSpec((tb, C, tl), lambda b, l: (b, 0, l)),
        ),
        compiler_params=pltpu.CompilerParams(
            dimension_semantics=("parallel", "parallel"), **compiler_kwargs),
        input_output_aliases=({0: 0} if donate_x else {}),
    )(x, gate)
    return out


def channel_gate_ref(x, w1, w2):
    """Pure-JAX reference mirroring the PyTorch module."""
    y = jnp.mean(x, axis=-1)                          # (B, C)
    h = jnp.maximum(y @ w1.T, 0.0)                    # (B, Cr)
    g = jax.nn.sigmoid(h @ w2.T)                      # (B, C)
    return x * g[:, :, None]


if __name__ == "__main__":
    # Module config: channel=8, reduction=True, r=2 -> fc1: (C//r, C), fc2: (C, C//r)
    B, C, L = 4, 8, 256
    r = 2
    Cr = C // r

    key = jax.random.PRNGKey(0)
    kx, k1, k2 = jax.random.split(key, 3)

    x = jax.random.normal(kx, (B, C, L), dtype=jnp.float32)
    # Deterministic weight init (Kaiming-uniform-like scale 1/sqrt(fan_in)).
    w1 = jax.random.uniform(k1, (Cr, C), dtype=jnp.float32,
                            minval=-1.0, maxval=1.0) / jnp.sqrt(C)
    w2 = jax.random.uniform(k2, (C, Cr), dtype=jnp.float32,
                            minval=-1.0, maxval=1.0) / jnp.sqrt(Cr)

    ref = channel_gate_ref(x, w1, w2)

    # Primary fused path (one batch-row slab fits VMEM easily at this shape).
    out_fused = jax.block_until_ready(channel_gate(x, w1, w2))
    assert out_fused.shape == (B, C, L)
    assert jnp.allclose(out_fused, ref, atol=1e-5, rtol=1e-5), "fused mismatch vs reference"

    # Force the two-pass fallback (tiny block budget -> tiled L) to exercise it too.
    out_split = jax.block_until_ready(channel_gate(x, w1, w2, block_cap_bytes=4096))
    assert jnp.allclose(out_split, ref, atol=1e-5, rtol=1e-5), "fallback mismatch vs reference"

    print("KERNEL_OK")
</pallas_src>

<mosaic_0001>
module attributes {stable_mosaic.version = 11 : i64} {
  func.func @_fused_kernel(%arg0: i32, %arg1: memref<2x8x256xf32, #tpu.memory_space<vmem>>, %arg2: memref<8x4xf32, #tpu.memory_space<vmem>>, %arg3: memref<4x8xf32, #tpu.memory_space<vmem>>, %arg4: memref<2x8x256xf32, #tpu.memory_space<vmem>>) attributes {dimension_semantics = [#tpu.dimension_semantics<parallel>], iteration_bounds = array<i64: 2>, scalar_prefetch = 0 : i64, scratch_operands = 0 : i64, tpu.core_type = #tpu.core_type<tc>, window_params = [{transform_indices = @transform_0, window_bounds = array<i64: 2, 8, 256>}, {pipeline_mode = #tpu.pipeline_mode<synchronous>, transform_indices = @transform_1, window_bounds = array<i64: 8, 4>}, {pipeline_mode = #tpu.pipeline_mode<synchronous>, transform_indices = @transform_2, window_bounds = array<i64: 4, 8>}, {transform_indices = @transform_3, window_bounds = array<i64: 2, 8, 256>}]} {
    %c0 = arith.constant 0 : index
    %c0_0 = arith.constant 0 : index
    %c0_1 = arith.constant 0 : index
    %0 = vector.load %arg1[%c0, %c0_0, %c0_1] : memref<2x8x256xf32, #tpu.memory_space<vmem>>, vector<2x8x256xf32>
    %cst = arith.constant dense<0.000000e+00> : vector<2x8xf32>
    %1 = vector.multi_reduction <add>, %0, %cst [2] : vector<2x8x256xf32> to vector<2x8xf32>
    %cst_2 = arith.constant 3.906250e-03 : f32
    %2 = vector.broadcast %cst_2 : f32 to vector<2x8xf32>
    %3 = arith.mulf %1, %2 : vector<2x8xf32>
    %c0_3 = arith.constant 0 : index
    %c0_4 = arith.constant 0 : index
    %4 = vector.load %arg2[%c0_3, %c0_4] : memref<8x4xf32, #tpu.memory_space<vmem>>, vector<8x4xf32>
    %cst_5 = arith.constant dense<0.000000e+00> : vector<2x4xf32>
    %5 = tpu.matmul %3, %4, %cst_5 {dimension_numbers = #tpu.dot_dimension_numbers<[1], [0], [0], [1], [0, 0, 1, 1], [], []>} : vector<2x8xf32>, vector<8x4xf32>, vector<2x4xf32> -> vector<2x4xf32>
    %cst_6 = arith.constant 0.000000e+00 : f32
    %6 = vector.broadcast %cst_6 : f32 to vector<2x4xf32>
    %7 = arith.maximumf %5, %6 : vector<2x4xf32>
    %c0_7 = arith.constant 0 : index
    %c0_8 = arith.constant 0 : index
    %8 = vector.load %arg3[%c0_7, %c0_8] : memref<4x8xf32, #tpu.memory_space<vmem>>, vector<4x8xf32>
    %cst_9 = arith.constant dense<0.000000e+00> : vector<2x8xf32>
    %9 = tpu.matmul %7, %8, %cst_9 {dimension_numbers = #tpu.dot_dimension_numbers<[1], [0], [0], [1], [0, 0, 1, 1], [], []>} : vector<2x4xf32>, vector<4x8xf32>, vector<2x8xf32> -> vector<2x8xf32>
    %10 = arith.negf %9 : vector<2x8xf32>
    %11 = math.exp %10 : vector<2x8xf32>
    %cst_10 = arith.constant 1.000000e+00 : f32
    %12 = vector.broadcast %cst_10 : f32 to vector<2x8xf32>
    %13 = arith.addf %12, %11 : vector<2x8xf32>
    %14 = arith.divf %12, %13 : vector<2x8xf32>
    %15 = vector.shape_cast %14 : vector<2x8xf32> to vector<2x8x1xf32>
    %16 = vector.broadcast %15 : vector<2x8x1xf32> to vector<2x8x256xf32>
    %17 = arith.mulf %0, %16 : vector<2x8x256xf32>
    %c0_11 = arith.constant 0 : index
    %c0_12 = arith.constant 0 : index
    %c0_13 = arith.constant 0 : index
    %18 = vector.load %arg4[%c0_11, %c0_12, %c0_13] : memref<2x8x256xf32, #tpu.memory_space<vmem>>, vector<2x8x256xf32>
    tpu.vector_store %arg4[%c0_11, %c0_12, %c0_13], %17 {strides = array<i32>} : memref<2x8x256xf32, #tpu.memory_space<vmem>>, vector<2x8x256xf32>,
    return
  }
  func.func @transform_0(%arg0: i32) -> (i32, i32, i32) {
    %c0_i32 = arith.constant 0 : i32
    %c0_i32_0 = arith.constant 0 : i32
    %c0_i32_1 = arith.constant 0 : i32
    return %arg0, %c0_i32, %c0_i32_0 : i32, i32, i32
  }
  func.func @transform_1(%arg0: i32) -> (i32, i32) {
    %c0_i32 = arith.constant 0 : i32
    %c0_i32_0 = arith.constant 0 : i32
    %c0_i32_1 = arith.constant 0 : i32
    return %c0_i32, %c0_i32_0 : i32, i32
  }
  func.func @transform_2(%arg0: i32) -> (i32, i32) {
    %c0_i32 = arith.constant 0 : i32
    %c0_i32_0 = arith.constant 0 : i32
    %c0_i32_1 = arith.constant 0 : i32
    return %c0_i32, %c0_i32_0 : i32, i32
  }
  func.func @transform_3(%arg0: i32) -> (i32, i32, i32) {
    %c0_i32 = arith.constant 0 : i32
    %c0_i32_0 = arith.constant 0 : i32
    %c0_i32_1 = arith.constant 0 : i32
    return %arg0, %c0_i32, %c0_i32_0 : i32, i32, i32
  }
}

</mosaic_0001>

<bundles_post_ra>
// kernel: tpu_custom_call.1
= control target key start
LH: loop header
LB: loop body
LE: loop exit
PB: predicated region body
PF: predicated region fallthrough
CT: control target
= control target key end

     0   :  { %8 = vsyncpa [#allocation3], 0  ;;  %s746_s0 = inlined_call_operand.hbm [shape: f32[4,8,256], index: 0, kind: input, shape index: {}]   ;;  %s747_s1 = inlined_call_operand.vmem [shape: f32[8,4], index: 1, kind: input, shape index: {}]   ;;  %s748_s2 = inlined_call_operand.vmem [shape: f32[4,8], index: 2, kind: input, shape index: {}]   ;;  %s749_s3 = inlined_call_operand.hbm [shape: f32[4,8,256], index: 3, kind: output, shape index: {}]  }
   0x1   :  { %10 = vsyncpa [#allocation3 + $0x1], 0 }
   0x2   :  { %11 = vsyncpa [#allocation4], 0 }
   0x3   :  { %13 = vsyncpa [#allocation4 + $0x1], 0  ;;  %s601_s12 = smov 0   ;;  %s603_s13 = smov 0  }
   0x4   :  { %s605_s14 = smov 0   ;;  %s607_s15 = smov 0  }
   0x5 LB: > { %s622_s16 = sadd.s32 4294967295, %s575_s15   ;;  %s399_s17 = sadd.s32 4294967294, %s575_s15   ;;  %s575_s15 = sphi %s607_s15, %s759_s15   ;;  %s571_s14 = sphi %s605_s14, %s758_s14   ;;  %s567_s13 = sphi %s603_s13, %s757_s13   ;;  %s563_s12 = sphi %s601_s12, %s756_s12  }
   0x6   : > { %s626_s18 = sadd.s32 1, %s575_s15   ;;  %s26_s19 = sadd.s32 1, %s571_s14 }
   0x7   : > { %s23_s20 = ssub.s32 %s575_s15, %s626_s18  ;;  %p33_p0 = scmp.ne.s32.totalorder %s571_s14, %s567_s13 }
   0x8   : > { %p24_p1 = scmp.eq.s32.totalorder %s23_s20, 0  ;;  %p34_p2 = scmp.eq.s32.totalorder %s575_s15, 0 }
   0x9   : > { %p39_p3 = scmp.ne.s32.totalorder %s567_s13, %s563_s12  ;;  %p40_p4 = scmp.eq.s32.totalorder %s622_s16, 0 }
   0xa   : > { %s638_s21 = scalar_select %p24_p1, %s571_s14, %s26_s19  }
   0xb   : > { %p640_p5 = por %p34_p2, %p33_p0  ;;  %p644_p6 = por %p40_p4, %p39_p3 }
   0xc   : > { %p105_p7 = scmp.eq.s32.totalorder %s622_s16, 1  ;;  %p111_p8 = scmp.eq.s32.totalorder %s399_s17, 1 }
   0xd   : > { %p435_p10 = scmp.lt.s32.totalorder %s575_s15, 2  ;;  %s137_s26 = sand.u32 1, %s571_s14  }
   0xe   : > { %p651_p11 = por %p105_p7, %p33_p0  ;;  %p655_p12 = por %p111_p8, %p39_p3 }
   0xf   : > { %s420_s27 = sshll.u32 %s575_s15, 5  ;;  %s402_s28 = sshll.u32 %s137_s26, 5 }
  0x10   : > { %s147_s4 = scalar_lea.hbm %s746_s0, %s420_s27  ;;  %s141_s6 = scalar_lea.vmem [#allocation2], %s402_s28 }
  0x11   : > { %s148_s5 = sshll.u32 %s147_s4, 4  ;;  %s150_s7 = sshll.u32 %s141_s6, 4  ;;  %s149_s5 = int_to_ptr.hbm [resolvable:$true] %s148_s5  ;;  %s151_s7 = int_to_ptr.vmem [resolvable:$true] %s150_s7 }
  0x12   : > { %p666_p13 = pnand %p435_p10, %p640_p5  ;;  %p406_p0 = scmp.ge.s32.totalorder %s575_s15, 1 }
  0x13   : > { %p158_p1 = scmp.lt.s32.totalorder %s575_s15, 3  ;;  %s138_s9 = scalar_lea.sflag [#allocation3], %s137_s26 }
  0x14   : > { %s479_s10 = sshra.s32 %s149_s5, 4  ;;  %p483_p3 = pneg %p666_p13  ;;  %s480_s10 = int_to_ptr.hbm [resolvable:$true] %s479_s10 }
  0x15   : > { %s481_s11 = scalar_lea.hbm %s480_s10, 32  ;;  %s486_s20 = scalar_lea.hbm %s746_s0, 64 }
  0x16   : > { %p482_p2 = scmp.ne.s32.totalorder %s480_s10, %s481_s11  ;;  %p487_p5 = scmp.lt.s32.totalorder %s480_s10, %s746_s0 }
  0x17   : > { %p488_p8 = scmp.lt.s32.totalorder %s486_s20, %s481_s11 }
  0x18   : > { %p484_p4 = pnand %p483_p3, %p482_p2 }
  0x19   : > { %p489_p10 = por %p488_p8, %p487_p5 }
  0x1a   : > { %p485_p7 = pneg %p484_p4 }
  0x1c   : > { %p490_p9 = pnand %p489_p10, %p485_p7 }
  0x1e   : > { %493 = shalt.err (!%p490_p9)
}
  0x1f   : > { %s577_s26 = smov 256   ;;  %s578_s28 = smov 16  }
  0x20   : > { %430 = dma.hbm_to_vmem [thread:$0]  (!%p666_p13), %s149_s5, 512, %s151_s7, %s138_s9, %s577_s26, %s577_s26, %s578_s28  }
  0x21   : > { %p159_p2 = pnand %p406_p0, %p158_p1 }
  0x22   : > { %s687_s29 = sand.u32 (!%p159_p2), 1, %s567_s13  }
  0x23   : > { %162 = sbr.rel (%p159_p2) target bundleno = 587 (0x24b), region = 32  ;;  %s407_s30 = sshll.u32 (!%p159_p2), %s687_s29, 5 }
  0x24   : > { %s165_s4 = scalar_lea.sflag (!%p159_p2), [#allocation3], %s687_s29  ;;  %s168_s6 = scalar_lea.vmem (!%p159_p2), [#allocation2], %s407_s30 }
  0x28   : > { %554 = dma.done.wait (%p644_p6), %s165_s4, 512  }
  0x29   : > { %556 = vsyncadd (%p644_p6), %s165_s4, 4294966784  ;;  %v194_v0 = vld [vmem:[%s168_s6] sm:$0xff]  ;;  %v195_v1 = vld [vmem:[%s168_s6 + $0x8] sm:$0xff]  ;;  %v209_v8 = vlaneseq  ;;  %vm213_vm0 = vcmask 1041409   ;;  %vm215_vm1 = vcmask 64512   ;;  %vm244_vm2 = vcmask 1043456  }
  0x2a   : > { %v198_v2 = vadd.f32 %v195_v1, %v194_v0  ;;  %v697_v3 = vld [vmem:[%s168_s6 + $0x10] sm:$0xff]  ;;  %v699_v4 = vld [vmem:[%s168_s6 + $0x18] sm:$0xff]  ;;  %v206_v6 = vld [vmem:[%s747_s1] sm:$0xff]  ;;  %vm240_vm3 = vcmask 31744   ;;  %s422_s9 = sshll.u32 %s622_s16, 5  ;;  %s191_s10 = scalar_lea.vmem [#allocation5], %s407_s30 }
  0x2b   : > { %v201_v5 = vadd.f32 %v699_v4, %v697_v3  ;;  %233 = vmatpush.msra.mxu0 %v206_v6  ;;  %v210_v9 = vand.u32 127, %v209_v8  ;;  %v239_v16 = vld [vmem:[%s748_s2] sm:$0xf]  ;;  %v289_v19 = vshrl.u32 %v209_v8, 7  ;;  %s322_s19 = scalar_lea.hbm %s749_s3, %s422_s9  ;;  %s323_s20 = sshll.u32 %s191_s10, 4  ;;  %s324_s20 = int_to_ptr.vmem [resolvable:$true] %s323_s20 }
  0x2c   : > { %199 = vadd.xlane.f32.xlu0 %v198_v2  ;;  %410 = vmatpush.msk.msra.mxu1 %vm244_vm2, %v239_v16  ;;  %s325_s22 = sshll.u32 %s322_s19, 4  ;;  %s310_s16 = scalar_lea.sflag [#allocation4], %s687_s29  ;;  %s326_s22 = int_to_ptr.hbm [resolvable:$true] %s325_s22 }
  0x2d   : > { %473 = vset.pattern.permute.xlu1 %v289_v19  ;;  %474 = vset.pattern.permute.xlu0 %v289_v19  ;;  %s523_s27 = sshra.s32 %s326_s22, 4  ;;  %s529_s4 = scalar_lea.hbm %s749_s3, 64  ;;  %s524_s27 = int_to_ptr.hbm [resolvable:$true] %s523_s27 }
  0x2e   : > { %s525_s26 = scalar_lea.hbm %s524_s27, 32  ;;  %p530_p0 = scmp.lt.s32.totalorder %s524_s27, %s749_s3 }
  0x2f   : > { %p526_p6 = scmp.ne.s32.totalorder %s524_s27, %s525_s26  ;;  %p531_p1 = scmp.lt.s32.totalorder %s529_s4, %s525_s26 }
  0x31   : > { %p527_p9 = pnand %p526_p6, %p651_p11  ;;  %p532_p3 = por %p531_p1, %p530_p0 }
  0x33   : > { %p528_p13 = pneg %p527_p9 }
  0x34   : > { %202 = vadd.xlane.f32.xlu0 %v201_v5 }
  0x35   : > { %p533_p4 = pnand %p532_p3, %p528_p13 }
  0x9f   : > { %v200_v7 = vpop.xlane.xlu0 %199 }
  0xa0   : > { %v204_v10 = vmul.f32 0.00390625, %v200_v7 }
  0xa2   : > { %v211_v13 = vperm.slane %v204_v10, %v210_v9 }
  0xa7   : > { %v203_v11 = vpop.xlane.xlu0 %202 }
  0xa8   : > { %v205_v12 = vmul.f32 0.00390625, %v203_v11 }
  0xaa   : > { %v212_v14 = vperm.slane %v205_v12, %v210_v9 }
  0xac   : > { %v214_v15 = vsel %vm213_vm0, %v212_v14, %v211_v13 }
  0xad   : > { %409 = vmatmul.msk.f32.vlgmr.msra.gmra.mxu0 %vm215_vm1, %v214_v15 }
 0x12a   : > { %v235_v17 = vpop.f32.mrf.mxu0 }
 0x12b   : > { %v238_v18 = vmax.f32 %v235_v17, 0.0 }
 0x12d   : > { %411 = vmatmul.msk.f32.vlgmr.msra.gmra.mxu1 %vm240_vm3, %v238_v18 }
 0x1aa   : > { %v265_v20 = vpop.f32.mrf.mxu1 }
 0x1ab   : > { %v412_v21 = vmul.f32 -1.442695, %v265_v20 }
 0x1ad   : > { %475 = vpow2.f32 %v412_v21 }
 0x1b3   : > { %v476_v22 = vpop.eup %475 }
 0x1b4   : > { %v271_v23 = vadd.f32 1.0, %v476_v22 }
 0x1b6   : > { %477 = vrcp.f32 %v271_v23  ;;  %v283_v27 = vand.u32 2147483648, %v271_v23  ;;  %v281_v29 = vand.u32 2147483647, %v271_v23  ;;  %vm277_vm5 = vweird.f32 %v271_v23 }
 0x1b8   : > { %v284_v31 = vor.u32 1.1754944e-38, %v283_v27  ;;  %vm282_vm7 = vcmp.eq.f32.partialorder %v281_v29, 8.507059e+37 }
 0x1bc   : > { %v478_v24 = vpop.eup %477 }
 0x1bd   : > { %v273_v25 = vmul.f32 %v478_v24, %v271_v23  ;;  %vm278_vm4 = vweird.f32 %v478_v24 }
 0x1be   : > { %vm279_vm6 = vmor %vm277_vm5, %vm278_vm4 }
 0x1bf   : > { %v274_v26 = vsub.f32 1.0, %v273_v25 }
 0x1c1   : > { %v275_v28 = vmul.f32 %v478_v24, %v274_v26 }
 0x1c3   : > { %v276_v30 = vadd.f32 %v478_v24, %v275_v28 }
 0x1c5   : > { %v280_v32 = vsel %vm279_vm6, %v478_v24, %v276_v30 }
 0x1c6   : > { %v285_v33 = vsel %vm282_vm7, %v284_v31, %v280_v32 }
 0x1c7   : > { %v287_v34 = vperm.slane %v285_v33, 0  ;;  %v294_v35 = vperm.slane %v285_v33, 1 }
 0x1c9   : > { %292 = vperm.xlu1 %473, %v287_v34  }
 0x1d1   : > { %299 = vperm.xlu1 %473, %v294_v35  }
 0x23b   : > { %v293_v36 = vpop.permute.xlu1 %292 }
 0x23c   : > { %v301_v37 = vmul.f32 %v293_v36, %v194_v0  ;;  %v302_v38 = vmul.f32 %v293_v36, %v195_v1 }
 0x23e   : > { %305 = vst [vmem:[%s191_s10] sm:$0xff] %v301_v37 }
 0x23f   : > { %306 = vst [vmem:[%s191_s10 + $0x8] sm:$0xff] %v302_v38 }
 0x243   : > { %v300_v39 = vpop.permute.xlu1 %299 }
 0x244   : > { %v303_v40 = vmul.f32 %v300_v39, %v697_v3  ;;  %v304_v41 = vmul.f32 %v300_v39, %v699_v4 }
 0x246   : > { %307 = vst [vmem:[%s191_s10 + $0x10] sm:$0xff] %v303_v40 }
 0x247   : > { %308 = vst [vmem:[%s191_s10 + $0x18] sm:$0xff] %v304_v41 }
 0x248   : > { %536 = shalt.err (!%p533_p4)
}
 0x249   : > { %s579_s29 = smov 256   ;;  %s580_s7 = smov 16  }
 0x24a   : > { %425 = dma.vmem_to_hbm [thread:$0]  (%p651_p11), %s324_s20, 512, %s326_s22, %s310_s16, %s579_s29, %s579_s29, %s580_s7  }
 0x24b PF: > { %s340_s23 = sand.u32 1, %s563_s12   ;;  %p755_p7 = scmp.ge.s32.totalorder %s575_s15, 2 }
 0x24c   : > { %s341_s8 = scalar_lea.sflag [#allocation4], %s340_s23 }
 0x24d   : > { %p432_p5 = pnand %p755_p7, %p655_p12 }
 0x24f   : > { %p433_p8 = pneg %p432_p5 }
 0x251   : > { %558 = dma.done.wait (%p433_p8), %s341_s8, 512  }
 0x252   : > { %560 = vsyncadd (%p433_p8), %s341_s8, 4294966784  ;;  %p16_p10 = scmp.ge.s32.totalorder %s626_s18, 4   ;;  %s756_s12 = smov %s567_s13 }
 0x253   : > { %s757_s13 = smov %s571_s14  ;;  %s758_s14 = smov %s638_s21 }
 0x254   : > { %s759_s15 = smov %s626_s18  ;;  %18 = sbr.rel (!%p16_p10) target bundleno = 5 (0x5), region = 77 }
 0x259   :  { %347 = vsyncpa [#allocation3], 1 }
 0x25a   :  { %349 = vsyncpa [#allocation3 + $0x1], 1 }
 0x25b   :  { %350 = vsyncpa [#allocation4], 1 }
 0x25c   :  { %352 = vsyncpa [#allocation4 + $0x1], 1 }

</bundles_post_ra>
